<compile_context>
chip_gen: v7x
topology: tpu7x:2x2x1
jax: 0.10.0
libtpu: 0.0.40
codegen_flags: <defaults>
</compile_context>

<pallas_src>
import functools

import jax
import jax.numpy as jnp
from jax import lax
from jax.experimental import pallas as pl
from jax.experimental.pallas import tpu as pltpu


def _round_up(v, m):
    return ((v + m - 1) // m) * m


def _deepjet_kernel(x_ref, o_ref, *, sm_rel, lo, span, prefix,
                    applylogittransform, logittransformfactor, eps):
    x = x_ref[...].astype(jnp.float32)                     # (bn, in_f)
    bn = x.shape[0]

    # Max over the selected logit columns (cheap VPU maxes on (bn,1) slices).
    # The shift cancels exactly in every ratio below; it only prevents
    # exp overflow for unbounded inputs.
    sel = [x[:, lo + r:lo + r + 1] for r in sm_rel]        # (bn, 1) each
    m = sel[0]
    for c in sel[1:]:
        m = jnp.maximum(m, c)

    # ONE exp over the contiguous lane slab covering all softmax columns:
    # a single EUP push per vreg row instead of one per column.
    es = jnp.exp(x[:, lo:lo + span] - m)                   # (bn, span)
    e = [es[:, r:r + 1] for r in sm_rel]                   # cheap lane slices
    e0, e1, e2, e3 = e[0], e[1], e[2], e[3]

    s23 = e2 + e3
    e01 = e0 + e1
    denom = e01 + s23
    for ek in e[4:]:                                       # extra softmax cols
        denom = denom + ek

    # Pack the five outputs lane-dense:
    #   [p0, p1, p1/(p1+p0), p1/(p1+p2+p3), p3/(p3+p2)]
    # = [e0, e1, e1, e1, e3] / [D, D, e0+e1, e1+s23, s23]
    # built with broadcast + select (VPU only), so the divide / clip / log
    # below are ONE pass over (bn, 5) instead of five lane-sparse passes.
    col = lax.broadcasted_iota(jnp.int32, (bn, 5), 1)
    num = jnp.where(col == 0, e0, jnp.where(col == 4, e3, e1))
    den = jnp.where(col < 2, denom,
                    jnp.where(col == 2, e01,
                              jnp.where(col == 3, e1 + s23, s23)))
    res = num / den                                        # one packed divide

    if applylogittransform:
        a = jnp.clip(res, eps, 1.0 - eps)
        res = logittransformfactor * jnp.log(a / (1.0 - a))  # one div + one log

    # Two stores per tile (was six): an aligned copy of the raw prefix columns
    # plus a single packed 5-wide result store.  The HBM writeback DMA is
    # contiguous since the output block spans full rows.
    # TODO(synk): collapsing to one store needs an unaligned minor-dim concat
    # (or a folded lane-dense output shape with an in-kernel relayout).
    if prefix > 0:
        o_ref[:, :prefix] = x[:, :prefix].astype(o_ref.dtype)
    o_ref[:, prefix:prefix + 5] = res.astype(o_ref.dtype)


def deepjet_constraint(x, deepjetindices, applylogittransform=False,
                       logittransformfactor=1.0, eps=1e-6, block_n=None):
    n, f = x.shape
    sm_abs = tuple(int(i) for i in deepjetindices[:-1])
    assert len(sm_abs) >= 4, "need at least 4 softmax indices"
    prefix = int(deepjetindices[0])
    out_f = (prefix + 5) if prefix > 0 else 5

    lo = min(sm_abs)
    span = max(sm_abs) - lo + 1
    sm_rel = tuple(i - lo for i in sm_abs)

    # Only stream the leading feature columns the kernel actually touches.
    needed = max([prefix] + [i + 1 for i in sm_abs])
    if f > 128:
        in_f = min(f, _round_up(needed, 128))   # multiple of 128 (lane rule)
    else:
        in_f = f                                # must equal full lane dim

    # ---- tile sizing -----------------------------------------------------
    # HBM traffic per row (read + write) and an estimate of the per-row VMEM
    # footprint (double-buffered in/out tiles + fp32 intermediates).
    hbm_bytes_per_row = (in_f + out_f) * 4
    vmem_bytes_per_row = (2 * (in_f + out_f) + 4 * (span + 5)) * 4

    if block_n is None:
        # Target ~4 MiB of HBM traffic per grid step so the ~0.35 us fixed
        # per-step overhead is well amortised.
        bn = max(8, (4 * 1024 * 1024) // hbm_bytes_per_row)
    else:
        bn = max(8, int(block_n))
    bn = min(_round_up(bn, 8), _round_up(n, 8))

    # Keep the working set ~12 MiB: comfortably under v5e's 16 MiB default
    # scoped VMEM limit and well under the explicit 24 MiB limit set below
    # (headroom on v7x, which has 64 MiB VMEM and a 32 MiB default scope).
    vmem_budget = 12 * 1024 * 1024
    while bn > 8 and bn * vmem_bytes_per_row > vmem_budget:
        bn = max(8, _round_up(bn // 2, 8))

    # Keep >= 4 (balanced) grid steps when there is enough work so the
    # "parallel" batch axis splits evenly across v7x's two TensorCores.
    if n >= 4 * 8:
        bn = min(bn, max(8, _round_up(-(-n // 4), 8)))

    kernel = functools.partial(
        _deepjet_kernel,
        sm_rel=sm_rel, lo=lo, span=span, prefix=prefix,
        applylogittransform=bool(applylogittransform),
        logittransformfactor=float(logittransformfactor),
        eps=float(eps))

    grid = (pl.cdiv(n, bn),)
    return pl.pallas_call(
        kernel,
        out_shape=jax.ShapeDtypeStruct((n, out_f), x.dtype),
        grid_spec=pltpu.PrefetchScalarGridSpec(
            num_scalar_prefetch=0,
            grid=grid,
            in_specs=[pl.BlockSpec((bn, in_f), lambda i: (i, 0))],
            out_specs=pl.BlockSpec((bn, out_f), lambda i: (i, 0))),
        compiler_params=pltpu.CompilerParams(
            dimension_semantics=("parallel",),
            vmem_limit_bytes=24 * 1024 * 1024),
    )(x)


def deepjet_constraint_ref(x, deepjetindices, applylogittransform=False,
                           logittransformfactor=1.0, eps=1e-6):
    """Pure-JAX reference mirroring the PyTorch forward."""
    sm_idx = jnp.array(deepjetindices[:-1], dtype=jnp.int32)
    e = jnp.exp(x[:, sm_idx])
    sm = e / jnp.sum(e, axis=1, keepdims=True)
    p0, p1, p2, p3 = (sm[:, k:k + 1] for k in range(4))
    analytical = jnp.concatenate(
        [p0, p1, p1 / (p1 + p0), p1 / (p1 + p2 + p3), p3 / (p3 + p2)], axis=1)
    if applylogittransform:
        a = jnp.clip(analytical, eps, 1.0 - eps)
        analytical = logittransformfactor * jnp.log(a / (1.0 - a))
    if deepjetindices[0] > 0:
        return jnp.concatenate([x[:, :deepjetindices[0]], analytical], axis=1)
    return analytical


if __name__ == "__main__":
    # No learned parameters in this module; only static buffers
    # (logittransformfactor, eps) baked in deterministically below.
    deepjetindices = [4, 5, 6, 7, 8]     # prefix=4 raw cols kept, softmax over cols 4..7
    applylogittransform = True
    logittransformfactor = 0.5
    eps = 1e-6

    key = jax.random.PRNGKey(0)
    batch, feat = 8, 16
    x = jax.random.normal(key, (batch, feat), dtype=jnp.float32)

    out = deepjet_constraint(
        x, deepjetindices,
        applylogittransform=applylogittransform,
        logittransformfactor=logittransformfactor,
        eps=eps)
    out = jax.block_until_ready(out)

    ref = deepjet_constraint_ref(
        x, deepjetindices,
        applylogittransform=applylogittransform,
        logittransformfactor=logittransformfactor,
        eps=eps)
    ref = jax.block_until_ready(ref)

    assert out.shape == (batch, deepjetindices[0] + 5), out.shape
    assert jnp.allclose(out, ref, atol=1e-5, rtol=1e-5), (
        "mismatch vs pure-JAX reference")

    print("KERNEL_OK")
</pallas_src>

<mosaic_0001>
module attributes {stable_mosaic.version = 11 : i64} {
  func.func @_deepjet_kernel(%arg0: i32, %arg1: memref<8x16xf32, #tpu.memory_space<vmem>>, %arg2: memref<8x9xf32, #tpu.memory_space<vmem>>) attributes {dimension_semantics = [#tpu.dimension_semantics<parallel>], iteration_bounds = array<i64: 1>, scalar_prefetch = 0 : i64, scratch_operands = 0 : i64, tpu.core_type = #tpu.core_type<tc>, window_params = [{transform_indices = @transform_0, window_bounds = array<i64: 8, 16>}, {transform_indices = @transform_1, window_bounds = array<i64: 8, 9>}]} {
    %c0 = arith.constant 0 : index
    %c0_0 = arith.constant 0 : index
    %0 = vector.load %arg1[%c0, %c0_0] : memref<8x16xf32, #tpu.memory_space<vmem>>, vector<8x16xf32>
    %1 = vector.extract_strided_slice %0 {offsets = [0, 4], sizes = [8, 1], strides = [1, 1]} : vector<8x16xf32> to vector<8x1xf32>
    %2 = vector.extract_strided_slice %0 {offsets = [0, 5], sizes = [8, 1], strides = [1, 1]} : vector<8x16xf32> to vector<8x1xf32>
    %3 = vector.extract_strided_slice %0 {offsets = [0, 6], sizes = [8, 1], strides = [1, 1]} : vector<8x16xf32> to vector<8x1xf32>
    %4 = vector.extract_strided_slice %0 {offsets = [0, 7], sizes = [8, 1], strides = [1, 1]} : vector<8x16xf32> to vector<8x1xf32>
    %5 = arith.maximumf %1, %2 : vector<8x1xf32>
    %6 = arith.maximumf %5, %3 : vector<8x1xf32>
    %7 = arith.maximumf %6, %4 : vector<8x1xf32>
    %8 = vector.extract_strided_slice %0 {offsets = [0, 4], sizes = [8, 4], strides = [1, 1]} : vector<8x16xf32> to vector<8x4xf32>
    %9 = vector.broadcast %7 : vector<8x1xf32> to vector<8x4xf32>
    %10 = arith.subf %8, %9 : vector<8x4xf32>
    %11 = math.exp %10 : vector<8x4xf32>
    %12 = vector.extract_strided_slice %11 {offsets = [0, 0], sizes = [8, 1], strides = [1, 1]} : vector<8x4xf32> to vector<8x1xf32>
    %13 = vector.extract_strided_slice %11 {offsets = [0, 1], sizes = [8, 1], strides = [1, 1]} : vector<8x4xf32> to vector<8x1xf32>
    %14 = vector.extract_strided_slice %11 {offsets = [0, 2], sizes = [8, 1], strides = [1, 1]} : vector<8x4xf32> to vector<8x1xf32>
    %15 = vector.extract_strided_slice %11 {offsets = [0, 3], sizes = [8, 1], strides = [1, 1]} : vector<8x4xf32> to vector<8x1xf32>
    %16 = arith.addf %14, %15 : vector<8x1xf32>
    %17 = arith.addf %12, %13 : vector<8x1xf32>
    %18 = arith.addf %17, %16 : vector<8x1xf32>
    %19 = tpu.iota {dimensions = array<i32: 1>} : vector<8x5xi32>
    %c0_i32 = arith.constant 0 : i32
    %20 = vector.broadcast %c0_i32 : i32 to vector<8x5xi32>
    %21 = arith.cmpi eq, %19, %20 : vector<8x5xi32>
    %c4_i32 = arith.constant 4 : i32
    %22 = vector.broadcast %c4_i32 : i32 to vector<8x5xi32>
    %23 = arith.cmpi eq, %19, %22 : vector<8x5xi32>
    %24 = vector.shape_cast %15 : vector<8x1xf32> to vector<8x1xf32>
    %25 = vector.broadcast %24 : vector<8x1xf32> to vector<8x5xf32>
    %26 = vector.shape_cast %13 : vector<8x1xf32> to vector<8x1xf32>
    %27 = vector.broadcast %26 : vector<8x1xf32> to vector<8x5xf32>
    %28 = arith.select %23, %25, %27 : vector<8x5xi1>, vector<8x5xf32>
    %29 = vector.shape_cast %12 : vector<8x1xf32> to vector<8x1xf32>
    %30 = vector.broadcast %29 : vector<8x1xf32> to vector<8x5xf32>
    %31 = arith.select %21, %30, %28 : vector<8x5xi1>, vector<8x5xf32>
    %c2_i32 = arith.constant 2 : i32
    %32 = vector.broadcast %c2_i32 : i32 to vector<8x5xi32>
    %33 = arith.cmpi slt, %19, %32 : vector<8x5xi32>
    %c2_i32_1 = arith.constant 2 : i32
    %34 = vector.broadcast %c2_i32_1 : i32 to vector<8x5xi32>
    %35 = arith.cmpi eq, %19, %34 : vector<8x5xi32>
    %c3_i32 = arith.constant 3 : i32
    %36 = vector.broadcast %c3_i32 : i32 to vector<8x5xi32>
    %37 = arith.cmpi eq, %19, %36 : vector<8x5xi32>
    %38 = arith.addf %13, %16 : vector<8x1xf32>
    %39 = vector.shape_cast %38 : vector<8x1xf32> to vector<8x1xf32>
    %40 = vector.broadcast %39 : vector<8x1xf32> to vector<8x5xf32>
    %41 = vector.shape_cast %16 : vector<8x1xf32> to vector<8x1xf32>
    %42 = vector.broadcast %41 : vector<8x1xf32> to vector<8x5xf32>
    %43 = arith.select %37, %40, %42 : vector<8x5xi1>, vector<8x5xf32>
    %44 = vector.shape_cast %17 : vector<8x1xf32> to vector<8x1xf32>
    %45 = vector.broadcast %44 : vector<8x1xf32> to vector<8x5xf32>
    %46 = arith.select %35, %45, %43 : vector<8x5xi1>, vector<8x5xf32>
    %47 = vector.shape_cast %18 : vector<8x1xf32> to vector<8x1xf32>
    %48 = vector.broadcast %47 : vector<8x1xf32> to vector<8x5xf32>
    %49 = arith.select %33, %48, %46 : vector<8x5xi1>, vector<8x5xf32>
    %50 = arith.divf %31, %49 : vector<8x5xf32>
    %cst = arith.constant 9.99999997E-7 : f32
    %cst_2 = arith.constant 0.999998986 : f32
    %51 = vector.broadcast %cst : f32 to vector<8x5xf32>
    %52 = arith.maximumf %51, %50 : vector<8x5xf32>
    %53 = vector.broadcast %cst_2 : f32 to vector<8x5xf32>
    %54 = arith.minimumf %53, %52 : vector<8x5xf32>
    %cst_3 = arith.constant 1.000000e+00 : f32
    %55 = vector.broadcast %cst_3 : f32 to vector<8x5xf32>
    %56 = arith.subf %55, %54 : vector<8x5xf32>
    %57 = arith.divf %54, %56 : vector<8x5xf32>
    %58 = math.log %57 : vector<8x5xf32>
    %cst_4 = arith.constant 5.000000e-01 : f32
    %59 = vector.broadcast %cst_4 : f32 to vector<8x5xf32>
    %60 = arith.mulf %59, %58 : vector<8x5xf32>
    %61 = vector.extract_strided_slice %0 {offsets = [0, 0], sizes = [8, 4], strides = [1, 1]} : vector<8x16xf32> to vector<8x4xf32>
    %c0_5 = arith.constant 0 : index
    %c0_6 = arith.constant 0 : index
    %62 = vector.load %arg2[%c0_5, %c0_6] : memref<8x9xf32, #tpu.memory_space<vmem>>, vector<8x4xf32>
    tpu.vector_store %arg2[%c0_5, %c0_6], %61 {strides = array<i32>} : memref<8x9xf32, #tpu.memory_space<vmem>>, vector<8x4xf32>,
    %c0_7 = arith.constant 0 : index
    %c4 = arith.constant 4 : index
    %63 = vector.load %arg2[%c0_7, %c4] : memref<8x9xf32, #tpu.memory_space<vmem>>, vector<8x5xf32>
    tpu.vector_store %arg2[%c0_7, %c4], %60 {strides = array<i32>} : memref<8x9xf32, #tpu.memory_space<vmem>>, vector<8x5xf32>,
    return
  }
  func.func @transform_0(%arg0: i32) -> (i32, i32) {
    %c0_i32 = arith.constant 0 : i32
    %c0_i32_0 = arith.constant 0 : i32
    return %arg0, %c0_i32 : i32, i32
  }
  func.func @transform_1(%arg0: i32) -> (i32, i32) {
    %c0_i32 = arith.constant 0 : i32
    %c0_i32_0 = arith.constant 0 : i32
    return %arg0, %c0_i32 : i32, i32
  }
}

</mosaic_0001>

<bundles_post_ra>
// kernel: tpu_custom_call.1
= control target key start
LH: loop header
LB: loop body
LE: loop exit
PB: predicated region body
PF: predicated region fallthrough
CT: control target
= control target key end

     0   :  { %6 = vsyncpa [#allocation3], 0  ;;  %s250_s0 = inlined_call_operand.hbm [shape: f32[8,16], index: 0, kind: input, shape index: {}]   ;;  %s251_s1 = inlined_call_operand.hbm [shape: f32[8,9], index: 1, kind: output, shape index: {}]  }
   0x1   :  { %7 = vsyncpa [#allocation4], 0  ;;  %s206_s6 = smov [#allocation2]   ;;  %s158_s10 = scalar_lea.hbm %s250_s0, 128 }
   0x2   :  { %s14_s7 = sshll.u32 %s206_s6, 4  ;;  %p159_p0 = scmp.ne.s32.totalorder %s250_s0, %s158_s10  ;;  %s15_s7 = int_to_ptr.vmem [resolvable:$true] %s14_s7 }
   0x3   :  { %p162_p1 = scmp.lt.u32.totalorder %s158_s10, %s250_s0 }
   0x5   :  { %p164_p2 = pnand %p162_p1, %p159_p0 }
   0x7   :  { %167 = shalt.err (!%p164_p2)
}
   0x8   :  { %s168_s15 = scalar_lea.vmem %s15_s7, 128  ;;  %p173_p4 = scmp.lt.s32.totalorder %s15_s7, %s15_s7 }
   0x9   :  { %p169_p3 = scmp.ne.s32.totalorder %s15_s7, %s168_s15  ;;  %p174_p5 = scmp.lt.s32.totalorder %s168_s15, %s168_s15 }
   0xb   :  { %p175_p6 = por %p174_p5, %p173_p4 }
   0xd   :  { %p176_p7 = pnand %p175_p6, %p169_p3 }
   0xf   :  { %179 = shalt.err (!%p176_p7)
}
  0x10   :  { %17 = dma.hbm_to_vmem [thread:$0]  %s250_s0, 128, %s15_s7, [#allocation3]  }
  0x11   :  { %202 = dma.done.wait [#allocation3], 128  }
  0x12   :  { %203 = vsyncadd [#allocation3], 4294967168  ;;  %v207_v0 = vmov 4   ;;  %vm109_vm0 = vcmask 31744   ;;  %v21_v1 = vld [vmem:[#allocation2] sm:$0xff]  ;;  %s208_s18 = smov 127   ;;  %v53_v21 = vlaneseq }
  0x13   :  { %142 = vset.pattern.permute.xlu1 %v207_v0  ;;  %110 = vst.msk [vmem:[#allocation5] sm:$0xff] %vm109_vm0, %v21_v1  ;;  %23 = vrot.lane.b32.xlu0 %v21_v1, %s208_s18  ;;  %s209_s19 = smov 125   ;;  %s210_s20 = smov 126   ;;  %v211_v11 = vmov 6   ;;  %v212_v15 = vmov 7   ;;  %v213_v16 = vmov 5  }
  0x14   :  { %31 = vrot.lane.b32.xlu1 %v21_v1, %s209_s19  ;;  %143 = vset.pattern.permute.xlu0 %v211_v11  ;;  %v54_v22 = vand.u32 127, %v53_v21  ;;  %s214_s0 = smov 4   ;;  %s215_s21 = smov [#allocation5]   ;;  %vm115_vm6 = vcmask 72736  }
  0x15   :  { %s123_s22 = sshll.u32 %s215_s21, 4  ;;  %s124_s22 = int_to_ptr.vmem [resolvable:$true] %s123_s22 }
  0x16   :  { %vm73_vm1 = vcmp.eq.s32.totalorder %v54_v22, 3  ;;  %vm72_vm2 = vcmp.eq.s32.totalorder %v54_v22, 2  ;;  %vm71_vm3 = vcmp.lt.s32.totalorder %v54_v22, 2  ;;  %vm56_vm4 = vcmp.eq.s32.totalorder %v54_v22, 4  ;;  %s180_s23 = scalar_lea.vmem %s124_s22, 128  ;;  %p185_p9 = scmp.lt.s32.totalorder %s124_s22, %s124_s22 }
  0x17   :  { %27 = vrot.lane.b32.xlu0 %v21_v1, %s210_s20  ;;  %vm55_vm5 = vcmp.eq.s32.totalorder %v54_v22, 0  ;;  %p181_p8 = scmp.ne.s32.totalorder %s124_s22, %s180_s23  ;;  %p186_p10 = scmp.lt.s32.totalorder %s180_s23, %s180_s23 }
  0x19   :  { %p187_p11 = por %p186_p10, %p185_p9 }
  0x1b   :  { %p188_p12 = pnand %p187_p11, %p181_p8 }
  0x85   :  { %v24_v2 = vpop.permute.xlu0 %23 }
  0x86   :  { %v26_v3 = vmax.f32 %v21_v1, %v24_v2  ;;  %v32_v5 = vpop.permute.xlu1 %31 }
  0x89   :  { %v28_v4 = vpop.permute.xlu0 %27 }
  0x8a   :  { %v30_v6 = vmax.f32 %v26_v3, %v28_v4 }
  0x8c   :  { %v34_v7 = vmax.f32 %v30_v6, %v32_v5 }
  0x8e   :  { %37 = vperm.xlu1 %142, %v34_v7  }
 0x10d   :  { %v38_v8 = vpop.permute.xlu1 %37 }
 0x10e   :  { %v40_v9 = vsub.f32 %v21_v1, %v38_v8 }
 0x110   :  { %v41_v10 = vmul.f32 1.442695, %v40_v9 }
 0x112   :  { %150 = vpow2.f32 %v41_v10 }
 0x11c   :  { %v151_v12 = vpop.eup %150 }
 0x11d   :  { %44 = vrot.lane.b32.xlu0 %v151_v12, %s208_s18 }
 0x18f   :  { %v45_v13 = vpop.permute.xlu0 %44 }
 0x190   :  { %v47_v14 = vadd.f32 %v151_v12, %v45_v13 }
 0x192   :  { %49 = vrot.lane.b32.xlu0 %v47_v14, %s210_s20  ;;  %74 = vrot.lane.b32.xlu1 %v47_v14, %s208_s18 }
 0x196   :  { %84 = vperm.xlu0 %143, %v47_v14   ;;  %89 = vperm.xlu1 %142, %v47_v14  }
 0x19a   :  { %146 = vset.pattern.permute.xlu0 %v212_v15  ;;  %144 = vset.pattern.permute.xlu1 %v213_v16 }
 0x19b   :  { %58 = vperm.xlu0 %146, %v151_v12  }
 0x19f   :  { %149 = vset.pattern.permute.xlu0 %v207_v0 }
 0x204   :  { %v75_v17 = vpop.permute.xlu1 %74  ;;  %v50_v19 = vpop.permute.xlu0 %49 }
 0x205   :  { %v77_v18 = vadd.f32 %v151_v12, %v75_v17  ;;  %v52_v20 = vadd.f32 %v50_v19, %v47_v14 }
 0x207   :  { %80 = vperm.xlu1 %144, %v77_v18  }
 0x20b   :  { %145 = vset.pattern.permute.xlu1 %v207_v0 }
 0x20c   :  { %95 = vperm.xlu1 %145, %v52_v20  }
 0x210   :  { %147 = vset.pattern.permute.xlu1 %v213_v16 }
 0x211   :  { %62 = vperm.xlu1 %147, %v151_v12  }
 0x215   :  { %148 = vset.pattern.permute.xlu1 %v207_v0  ;;  %v90_v23 = vpop.permute.xlu1 %89  ;;  %v85_v25 = vpop.permute.xlu0 %84 }
 0x216   :  { %67 = vperm.xlu1 %148, %v151_v12  }
 0x21a   :  { %v59_v31 = vpop.permute.xlu0 %58 }
 0x286   :  { %v81_v24 = vpop.permute.xlu1 %80 }
 0x287   :  { %v87_v26 = vsel %vm73_vm1, %v81_v24, %v85_v25 }
 0x288   :  { %v92_v27 = vsel %vm72_vm2, %v90_v23, %v87_v26 }
 0x28b   :  { %v96_v28 = vpop.permute.xlu1 %95 }
 0x28c   :  { %v98_v29 = vsel %vm71_vm3, %v96_v28, %v92_v27 }
 0x28d   :  { %152 = vrcp.f32 %v98_v29 }
 0x290   :  { %v63_v30 = vpop.permute.xlu1 %62 }
 0x291   :  { %v65_v32 = vsel %vm56_vm4, %v59_v31, %v63_v30 }
 0x295   :  { %v68_v33 = vpop.permute.xlu1 %67 }
 0x296   :  { %v70_v34 = vsel %vm55_vm5, %v68_v33, %v65_v32 }
 0x297   :  { %v153_v35 = vpop.eup %152 }
 0x298   :  { %v100_v36 = vmul.f32 %v153_v35, %v70_v34 }
 0x29a   :  { %v101_v37 = vmax.f32 %v100_v36, 1e-06 }
 0x29c   :  { %v102_v38 = vmin.f32 %v101_v37, 0.999999 }
 0x29e   :  { %v103_v39 = vsub.f32 1.0, %v102_v38 }
 0x2a0   :  { %154 = vrcp.f32 %v103_v39 }
 0x2aa   :  { %v155_v40 = vpop.eup %154 }
 0x2ab   :  { %v105_v41 = vmul.f32 %v155_v40, %v102_v38 }
 0x2ad   :  { %156 = vlog2.f32 %v105_v41 }
 0x2b7   :  { %v157_v42 = vpop.eup %156 }
 0x2b8   :  { %v107_v43 = vmul.f32 0.6931472, %v157_v42 }
 0x2ba   :  { %v108_v44 = vmul.f32 0.5, %v107_v43 }
 0x2bc   :  { %112 = vrot.lane.b32.xlu0 %v108_v44, %s214_s0 }
 0x32e   :  { %v113_v45 = vpop.permute.xlu0 %112 }
 0x32f   :  { %116 = vst.msk [vmem:[#allocation5] sm:$0xff] %vm115_vm6, %v113_v45 }
 0x330   :  { %191 = shalt.err (!%p188_p12)
}
 0x331   :  { %s192_s26 = scalar_lea.hbm %s251_s1, 128 }
 0x332   :  { %p193_p13 = scmp.ne.s32.totalorder %s251_s1, %s192_s26  ;;  %p196_p0 = scmp.lt.u32.totalorder %s192_s26, %s251_s1 }
 0x334   :  { %p198_p1 = pnand %p196_p0, %p193_p13 }
 0x336   :  { %201 = shalt.err (!%p198_p1)
}
 0x337   :  { %126 = dma.vmem_to_hbm [thread:$0]  %s124_s22, 128, %s251_s1, [#allocation4]  }
 0x338   :  { %204 = dma.done.wait [#allocation4], 128  }
 0x339   :  { %205 = vsyncadd [#allocation4], 4294967168 }
 0x33a   :  { %130 = vsyncpa [#allocation3], 1 }
 0x33b   :  { %131 = vsyncpa [#allocation4], 1 }

</bundles_post_ra>
